<compile_context>
chip_gen: v7x
topology: tpu7x:2x2x1
jax: 0.10.0
libtpu: 0.0.40
codegen_flags: <defaults>
</compile_context>

<pallas_src>
import functools

import jax
import jax.numpy as jnp
from jax.experimental import pallas as pl
from jax.experimental.pallas import tpu as pltpu


def _cdiv(a, b):
    return -(-a // b)


def _diffusion_loss_kernel(a_sm, s_sm, w_sm, b_sm, x_ref, n_ref, out_ref,
                           acc_ref, *, C, R, T, HW, need_mask):
    """One (batch, spatial-chunk, spatial-tile) step.

    q_sample + synthetic 1x1-conv model + channel-folded squared error,
    accumulated elementwise into a dense (R, 128) VMEM scratch; a single
    sublane reduce per (batch, chunk) happens in the final pl.when.
    """
    bi = pl.program_id(0)          # batch index        ("parallel")
    pi = pl.program_id(1)          # spatial chunk      ("parallel", v7x 2-TC)
    ti = pl.program_id(2)          # spatial tile       ("arbitrary" reduction)

    @pl.when(ti == 0)
    def _():
        acc_ref[...] = jnp.zeros_like(acc_ref)

    a = a_sm[bi]                   # sqrt_alphas_cumprod[t[bi]]       (SMEM scalar)
    s = s_sm[bi]                   # sqrt(1 - alphas_cumprod[t[bi]])  (SMEM scalar)

    # Per-channel full (R, 128) slabs: lane- and sublane-dense VPU work.
    noise = []
    x_noisy = []
    for ci in range(C):
        nc = n_ref[0, ci].astype(jnp.float32)        # (R, 128)
        xc = x_ref[0, ci].astype(jnp.float32)        # (R, 128)
        noise.append(nc)
        x_noisy.append(a * xc + s * nc)              # q_sample: scalar*vreg FMAs

    # Synthetic model (1x1 conv): pred[co] = sum_ci w[co,ci]*x_noisy[ci] + b[co].
    # C is tiny, so this stays as C*C scalar*vector FMAs on the VPU (no MXU).
    # Squared error is folded across channels into a single dense (R,128) slab.
    sq = None
    for co in range(C):
        pred = w_sm[co * C] * x_noisy[0]
        for ci in range(1, C):
            pred = pred + w_sm[co * C + ci] * x_noisy[ci]
        d = (pred + b_sm[co]) - noise[co]
        sq = d * d if sq is None else sq + d * d

    if need_mask:
        # Zero-padded spatial tail: zero out invalid positions before reducing.
        rows = jax.lax.broadcasted_iota(jnp.int32, sq.shape, 0) + (pi * T + ti) * R
        lanes = jax.lax.broadcasted_iota(jnp.int32, sq.shape, 1)
        sq = jnp.where(rows * 128 + lanes < HW, sq, 0.0)

    acc_ref[...] += sq

    @pl.when(ti == T - 1)
    def _():
        # One sublane (XLU) reduce per (batch, chunk); lane-dense (1,128) store.
        out_ref[0, 0] = jnp.sum(acc_ref[...], axis=0, keepdims=True)


def _plan_spatial(HW, C, B, itemsize, budget_bytes=4 << 20):
    """Pick (P, T, R, rows_pad): P parallel spatial chunks, T row-tiles per
    chunk, R 128-lane rows per tile, rows_pad total (padded) rows.

    R is capped so (2 streamed inputs x 2 pipeline buffers x block bytes) stays
    within `budget_bytes` -- already at/near the HBM roofline per measured
    pipelining data, and well inside v5e's 16 MiB / v7x's 32 MiB default
    scoped-VMEM limits.
    """
    n_rows = _cdiv(HW, 128)                              # valid 128-lane rows
    r_cap = budget_bytes // (2 * 2 * C * 128 * itemsize)
    r_cap = max(8, (r_cap // 8) * 8)

    # Split the spatial axis into 2 parallel chunks only when batch alone can't
    # keep both v7x TensorCores busy (odd/1 batch) and there is enough spatial
    # work.  No effect on single-TC v5e/v6e.
    P = 2 if (B % 2 == 1 and n_rows >= 16) else 1

    per_chunk = _cdiv(n_rows, P)
    if per_chunk <= r_cap:
        T = 1
        if P == 1 and per_chunk < 8:
            R = per_chunk            # block dim == full (tiny) array dim: legal
        else:
            R = _cdiv(per_chunk, 8) * 8
    else:
        R = r_cap
        T = _cdiv(per_chunk, R)
    rows_pad = P * T * R
    return P, T, R, rows_pad


def diffusion_loss_pallas(x_bcr, noise_bcr, a_b, s_b, w_flat, bias, *,
                          HW, P, T, R, need_mask):
    """x_bcr/noise_bcr: (B, C, rows_pad, 128); a_b/s_b: (B,) per-batch q_sample
    coefficients; w_flat: (C*C,) row-major (co, ci); bias: (C,).

    Returns lane-dense per-(batch, chunk) partial sums, shape (B, P, 1, 128).
    """
    B, C, rows_pad, _ = x_bcr.shape
    grid = (B, P, T)

    kernel = functools.partial(_diffusion_loss_kernel,
                               C=C, R=R, T=T, HW=HW, need_mask=need_mask)

    # Tiny grid-invariant operands live whole in SMEM (no per-step DMA).
    # (Scalar prefetch would also work; kept as SMEM operands since they are
    #  already resident and not part of the streamed-input pipeline.)
    smem_spec = pl.BlockSpec(memory_space=pltpu.MemorySpace.SMEM)
    stream_spec = pl.BlockSpec((1, C, R, 128),
                               lambda b, p, t: (b, 0, p * T + t, 0))
    # NOTE: if profiling shows exposed DMA with small tiles, add
    # pipeline_mode=pl.Buffered(3) to the streamed specs.

    return pl.pallas_call(
        kernel,
        out_shape=jax.ShapeDtypeStruct((B, P, 1, 128), jnp.float32),
        grid_spec=pltpu.PrefetchScalarGridSpec(
            num_scalar_prefetch=0,
            grid=grid,
            in_specs=[
                smem_spec,        # a_b   (B,)
                smem_spec,        # s_b   (B,)
                smem_spec,        # w     (C*C,)
                smem_spec,        # bias  (C,)
                stream_spec,      # x     (B, C, rows_pad, 128)
                stream_spec,      # noise (B, C, rows_pad, 128)
            ],
            out_specs=pl.BlockSpec((1, 1, 1, 128), lambda b, p, t: (b, p, 0, 0)),
            scratch_shapes=[pltpu.VMEM((R, 128), jnp.float32)],
        ),
        compiler_params=pltpu.CompilerParams(
            dimension_semantics=("parallel", "parallel", "arbitrary"),
            vmem_limit_bytes=32 * 1024 * 1024,
        ),
    )(a_b, s_b, w_flat, bias, x_bcr, noise_bcr)


def make_schedule(timesteps=1000, linear_start=0.01, linear_end=0.2):
    """register_schedule with beta_schedule='linear' (module __init__ defaults)."""
    betas = jnp.linspace(linear_start, linear_end, timesteps, dtype=jnp.float32)
    alphas = 1.0 - betas
    alphas_cumprod = jnp.cumprod(alphas)
    return jnp.sqrt(alphas_cumprod), jnp.sqrt(1.0 - alphas_cumprod)


def diffusion_sampler_forward(x_nchw, key, *, timesteps=1000, w_conv=None,
                              b_conv=None, stream_dtype=jnp.float32):
    """Mirrors DiffusionSampler.forward(x) -> scalar l2 loss."""
    B, C, H, W = x_nchw.shape
    HW = H * W

    kt, kn = jax.random.split(key, 2)
    t = jax.random.randint(kt, (B,), 0, timesteps)                  # t = randint(...)
    noise_nchw = jax.random.normal(kn, x_nchw.shape, jnp.float32)   # noise = randn_like(x)

    sqrt_ac, sqrt_1m_ac = make_schedule(timesteps=timesteps)
    a_b = sqrt_ac[t].astype(jnp.float32)      # (B,) per-batch coeffs -> SMEM
    s_b = sqrt_1m_ac[t].astype(jnp.float32)   # (B,)

    itemsize = jnp.dtype(stream_dtype).itemsize
    P, T, R, rows_pad = _plan_spatial(HW, C, B, itemsize)
    need_mask = (rows_pad * 128) != HW

    def to_slabs(arr):
        # Pure view of NCHW with spatial on lanes in full (rows, 128) slabs.
        a = arr.reshape(B, C, HW).astype(stream_dtype)
        pad = rows_pad * 128 - HW
        if pad:
            a = jnp.pad(a, ((0, 0), (0, 0), (0, pad)))
        return a.reshape(B, C, rows_pad, 128)

    x_bcr = to_slabs(x_nchw)
    n_bcr = to_slabs(noise_nchw)

    # Synthetic model params: 1x1 conv weight (C_out, C_in) flattened row-major, bias (C,).
    w_flat = w_conv.reshape(C * C).astype(jnp.float32)
    bias = b_conv.reshape(C).astype(jnp.float32)

    partials = diffusion_loss_pallas(x_bcr, n_bcr, a_b, s_b, w_flat, bias,
                                     HW=HW, P=P, T=T, R=R, need_mask=need_mask)
    return jnp.sum(partials) / jnp.float32(B * C * HW)   # mse mean (scalar glue)


def _reference_loss(x_nchw, key, *, timesteps, w_conv, b_conv):
    """Pure-JAX reference for correctness checking (same RNG draws)."""
    B, C, H, W = x_nchw.shape
    kt, kn = jax.random.split(key, 2)
    t = jax.random.randint(kt, (B,), 0, timesteps)
    noise = jax.random.normal(kn, x_nchw.shape, jnp.float32)
    sqrt_ac, sqrt_1m_ac = make_schedule(timesteps=timesteps)
    a = sqrt_ac[t].reshape(B, 1, 1, 1)
    s = sqrt_1m_ac[t].reshape(B, 1, 1, 1)
    x_noisy = a * x_nchw + s * noise
    pred = jnp.einsum('oc,bchw->bohw', w_conv, x_noisy,
                      precision=jax.lax.Precision.HIGHEST) + b_conv.reshape(1, C, 1, 1)
    return jnp.mean((pred - noise) ** 2)


if __name__ == "__main__":
    B, C, H, W = 2, 4, 16, 16
    TIMESTEPS = 1000

    key = jax.random.PRNGKey(0)
    k_x, k_fwd, k_w, k_b = jax.random.split(key, 4)

    x = jax.random.normal(k_x, (B, C, H, W), jnp.float32)
    # Deterministic synthetic model params (1x1 conv: weight (C_out, C_in), bias (C,)).
    w_conv = 0.1 * jax.random.normal(k_w, (C, C), jnp.float32)
    b_conv = 0.05 * jax.random.normal(k_b, (C,), jnp.float32)

    loss = diffusion_sampler_forward(x, k_fwd, timesteps=TIMESTEPS,
                                     w_conv=w_conv, b_conv=b_conv)
    loss = jax.block_until_ready(loss)

    ref = _reference_loss(x, k_fwd, timesteps=TIMESTEPS,
                          w_conv=w_conv, b_conv=b_conv)
    ref = jax.block_until_ready(ref)

    assert jnp.allclose(loss, ref, rtol=1e-4, atol=1e-5), (loss, ref)
    print("KERNEL_OK")
</pallas_src>

<mosaic_0001>
module attributes {stable_mosaic.version = 11 : i64} {
  func.func @_diffusion_loss_kernel(%arg0: i32, %arg1: i32, %arg2: i32, %arg3: memref<2xf32, #tpu.memory_space<smem>>, %arg4: memref<2xf32, #tpu.memory_space<smem>>, %arg5: memref<16xf32, #tpu.memory_space<smem>>, %arg6: memref<4xf32, #tpu.memory_space<smem>>, %arg7: memref<1x4x2x128xf32, #tpu.memory_space<vmem>>, %arg8: memref<1x4x2x128xf32, #tpu.memory_space<vmem>>, %arg9: memref<1x1x1x128xf32, #tpu.memory_space<vmem>>, %arg10: memref<2x128xf32, #tpu.memory_space<vmem>>) attributes {dimension_semantics = [#tpu.dimension_semantics<parallel>, #tpu.dimension_semantics<parallel>, #tpu.dimension_semantics<arbitrary>], iteration_bounds = array<i64: 2, 1, 1>, scalar_prefetch = 0 : i64, scratch_operands = 1 : i64, tpu.core_type = #tpu.core_type<tc>, window_params = [{transform_indices = @transform_0, window_bounds = array<i64: 2>}, {transform_indices = @transform_1, window_bounds = array<i64: 2>}, {transform_indices = @transform_2, window_bounds = array<i64: 16>}, {transform_indices = @transform_3, window_bounds = array<i64: 4>}, {transform_indices = @transform_4, window_bounds = array<i64: 1, 4, 2, 128>}, {transform_indices = @transform_5, window_bounds = array<i64: 1, 4, 2, 128>}, {transform_indices = @transform_6, window_bounds = array<i64: 1, 1, 1, 128>}]} {
    %c0_i32 = arith.constant 0 : i32
    %0 = arith.cmpi eq, %arg2, %c0_i32 : i32
    %1 = arith.extui %0 : i1 to i32
    %c0_i32_0 = arith.constant 0 : i32
    %2 = arith.cmpi ne, %1, %c0_i32_0 : i32
    scf.if %2 {
      %cst = arith.constant 0.000000e+00 : f32
      %132 = vector.broadcast %cst : f32 to vector<2x128xf32>
      %c0_43 = arith.constant 0 : index
      %c0_44 = arith.constant 0 : index
      %133 = vector.load %arg10[%c0_43, %c0_44] : memref<2x128xf32, #tpu.memory_space<vmem>>, vector<2x128xf32>
      tpu.vector_store %arg10[%c0_43, %c0_44], %132 {strides = array<i32>} : memref<2x128xf32, #tpu.memory_space<vmem>>, vector<2x128xf32>,
    } else {
    }
    %3 = arith.index_cast %arg0 : i32 to index
    %4 = memref.load %arg3[%3] : memref<2xf32, #tpu.memory_space<smem>>
    %5 = arith.index_cast %arg0 : i32 to index
    %6 = memref.load %arg4[%5] : memref<2xf32, #tpu.memory_space<smem>>
    %c0 = arith.constant 0 : index
    %c0_1 = arith.constant 0 : index
    %c0_2 = arith.constant 0 : index
    %c0_3 = arith.constant 0 : index
    %7 = vector.load %arg8[%c0, %c0_1, %c0_2, %c0_3] : memref<1x4x2x128xf32, #tpu.memory_space<vmem>>, vector<1x1x2x128xf32>
    %8 = vector.shape_cast %7 : vector<1x1x2x128xf32> to vector<2x128xf32>
    %c0_4 = arith.constant 0 : index
    %c0_5 = arith.constant 0 : index
    %c0_6 = arith.constant 0 : index
    %c0_7 = arith.constant 0 : index
    %9 = vector.load %arg7[%c0_4, %c0_5, %c0_6, %c0_7] : memref<1x4x2x128xf32, #tpu.memory_space<vmem>>, vector<1x1x2x128xf32>
    %10 = vector.shape_cast %9 : vector<1x1x2x128xf32> to vector<2x128xf32>
    %11 = vector.broadcast %4 : f32 to vector<2x128xf32>
    %12 = arith.mulf %11, %10 : vector<2x128xf32>
    %13 = vector.broadcast %6 : f32 to vector<2x128xf32>
    %14 = arith.mulf %13, %8 : vector<2x128xf32>
    %15 = arith.addf %12, %14 : vector<2x128xf32>
    %c0_8 = arith.constant 0 : index
    %c1 = arith.constant 1 : index
    %c0_9 = arith.constant 0 : index
    %c0_10 = arith.constant 0 : index
    %16 = vector.load %arg8[%c0_8, %c1, %c0_9, %c0_10] : memref<1x4x2x128xf32, #tpu.memory_space<vmem>>, vector<1x1x2x128xf32>
    %17 = vector.shape_cast %16 : vector<1x1x2x128xf32> to vector<2x128xf32>
    %c0_11 = arith.constant 0 : index
    %c1_12 = arith.constant 1 : index
    %c0_13 = arith.constant 0 : index
    %c0_14 = arith.constant 0 : index
    %18 = vector.load %arg7[%c0_11, %c1_12, %c0_13, %c0_14] : memref<1x4x2x128xf32, #tpu.memory_space<vmem>>, vector<1x1x2x128xf32>
    %19 = vector.shape_cast %18 : vector<1x1x2x128xf32> to vector<2x128xf32>
    %20 = vector.broadcast %4 : f32 to vector<2x128xf32>
    %21 = arith.mulf %20, %19 : vector<2x128xf32>
    %22 = vector.broadcast %6 : f32 to vector<2x128xf32>
    %23 = arith.mulf %22, %17 : vector<2x128xf32>
    %24 = arith.addf %21, %23 : vector<2x128xf32>
    %c0_15 = arith.constant 0 : index
    %c2 = arith.constant 2 : index
    %c0_16 = arith.constant 0 : index
    %c0_17 = arith.constant 0 : index
    %25 = vector.load %arg8[%c0_15, %c2, %c0_16, %c0_17] : memref<1x4x2x128xf32, #tpu.memory_space<vmem>>, vector<1x1x2x128xf32>
    %26 = vector.shape_cast %25 : vector<1x1x2x128xf32> to vector<2x128xf32>
    %c0_18 = arith.constant 0 : index
    %c2_19 = arith.constant 2 : index
    %c0_20 = arith.constant 0 : index
    %c0_21 = arith.constant 0 : index
    %27 = vector.load %arg7[%c0_18, %c2_19, %c0_20, %c0_21] : memref<1x4x2x128xf32, #tpu.memory_space<vmem>>, vector<1x1x2x128xf32>
    %28 = vector.shape_cast %27 : vector<1x1x2x128xf32> to vector<2x128xf32>
    %29 = vector.broadcast %4 : f32 to vector<2x128xf32>
    %30 = arith.mulf %29, %28 : vector<2x128xf32>
    %31 = vector.broadcast %6 : f32 to vector<2x128xf32>
    %32 = arith.mulf %31, %26 : vector<2x128xf32>
    %33 = arith.addf %30, %32 : vector<2x128xf32>
    %c0_22 = arith.constant 0 : index
    %c3 = arith.constant 3 : index
    %c0_23 = arith.constant 0 : index
    %c0_24 = arith.constant 0 : index
    %34 = vector.load %arg8[%c0_22, %c3, %c0_23, %c0_24] : memref<1x4x2x128xf32, #tpu.memory_space<vmem>>, vector<1x1x2x128xf32>
    %35 = vector.shape_cast %34 : vector<1x1x2x128xf32> to vector<2x128xf32>
    %c0_25 = arith.constant 0 : index
    %c3_26 = arith.constant 3 : index
    %c0_27 = arith.constant 0 : index
    %c0_28 = arith.constant 0 : index
    %36 = vector.load %arg7[%c0_25, %c3_26, %c0_27, %c0_28] : memref<1x4x2x128xf32, #tpu.memory_space<vmem>>, vector<1x1x2x128xf32>
    %37 = vector.shape_cast %36 : vector<1x1x2x128xf32> to vector<2x128xf32>
    %38 = vector.broadcast %4 : f32 to vector<2x128xf32>
    %39 = arith.mulf %38, %37 : vector<2x128xf32>
    %40 = vector.broadcast %6 : f32 to vector<2x128xf32>
    %41 = arith.mulf %40, %35 : vector<2x128xf32>
    %42 = arith.addf %39, %41 : vector<2x128xf32>
    %c0_29 = arith.constant 0 : index
    %43 = memref.load %arg5[%c0_29] : memref<16xf32, #tpu.memory_space<smem>>
    %44 = vector.broadcast %43 : f32 to vector<2x128xf32>
    %45 = arith.mulf %44, %15 : vector<2x128xf32>
    %c1_30 = arith.constant 1 : index
    %46 = memref.load %arg5[%c1_30] : memref<16xf32, #tpu.memory_space<smem>>
    %47 = vector.broadcast %46 : f32 to vector<2x128xf32>
    %48 = arith.mulf %47, %24 : vector<2x128xf32>
    %49 = arith.addf %45, %48 : vector<2x128xf32>
    %c2_31 = arith.constant 2 : index
    %50 = memref.load %arg5[%c2_31] : memref<16xf32, #tpu.memory_space<smem>>
    %51 = vector.broadcast %50 : f32 to vector<2x128xf32>
    %52 = arith.mulf %51, %33 : vector<2x128xf32>
    %53 = arith.addf %49, %52 : vector<2x128xf32>
    %c3_32 = arith.constant 3 : index
    %54 = memref.load %arg5[%c3_32] : memref<16xf32, #tpu.memory_space<smem>>
    %55 = vector.broadcast %54 : f32 to vector<2x128xf32>
    %56 = arith.mulf %55, %42 : vector<2x128xf32>
    %57 = arith.addf %53, %56 : vector<2x128xf32>
    %c0_33 = arith.constant 0 : index
    %58 = memref.load %arg6[%c0_33] : memref<4xf32, #tpu.memory_space<smem>>
    %59 = vector.broadcast %58 : f32 to vector<2x128xf32>
    %60 = arith.addf %57, %59 : vector<2x128xf32>
    %61 = arith.subf %60, %8 : vector<2x128xf32>
    %62 = arith.mulf %61, %61 : vector<2x128xf32>
    %c4 = arith.constant 4 : index
    %63 = memref.load %arg5[%c4] : memref<16xf32, #tpu.memory_space<smem>>
    %64 = vector.broadcast %63 : f32 to vector<2x128xf32>
    %65 = arith.mulf %64, %15 : vector<2x128xf32>
    %c5 = arith.constant 5 : index
    %66 = memref.load %arg5[%c5] : memref<16xf32, #tpu.memory_space<smem>>
    %67 = vector.broadcast %66 : f32 to vector<2x128xf32>
    %68 = arith.mulf %67, %24 : vector<2x128xf32>
    %69 = arith.addf %65, %68 : vector<2x128xf32>
    %c6 = arith.constant 6 : index
    %70 = memref.load %arg5[%c6] : memref<16xf32, #tpu.memory_space<smem>>
    %71 = vector.broadcast %70 : f32 to vector<2x128xf32>
    %72 = arith.mulf %71, %33 : vector<2x128xf32>
    %73 = arith.addf %69, %72 : vector<2x128xf32>
    %c7 = arith.constant 7 : index
    %74 = memref.load %arg5[%c7] : memref<16xf32, #tpu.memory_space<smem>>
    %75 = vector.broadcast %74 : f32 to vector<2x128xf32>
    %76 = arith.mulf %75, %42 : vector<2x128xf32>
    %77 = arith.addf %73, %76 : vector<2x128xf32>
    %c1_34 = arith.constant 1 : index
    %78 = memref.load %arg6[%c1_34] : memref<4xf32, #tpu.memory_space<smem>>
    %79 = vector.broadcast %78 : f32 to vector<2x128xf32>
    %80 = arith.addf %77, %79 : vector<2x128xf32>
    %81 = arith.subf %80, %17 : vector<2x128xf32>
    %82 = arith.mulf %81, %81 : vector<2x128xf32>
    %83 = arith.addf %62, %82 : vector<2x128xf32>
    %c8 = arith.constant 8 : index
    %84 = memref.load %arg5[%c8] : memref<16xf32, #tpu.memory_space<smem>>
    %85 = vector.broadcast %84 : f32 to vector<2x128xf32>
    %86 = arith.mulf %85, %15 : vector<2x128xf32>
    %c9 = arith.constant 9 : index
    %87 = memref.load %arg5[%c9] : memref<16xf32, #tpu.memory_space<smem>>
    %88 = vector.broadcast %87 : f32 to vector<2x128xf32>
    %89 = arith.mulf %88, %24 : vector<2x128xf32>
    %90 = arith.addf %86, %89 : vector<2x128xf32>
    %c10 = arith.constant 10 : index
    %91 = memref.load %arg5[%c10] : memref<16xf32, #tpu.memory_space<smem>>
    %92 = vector.broadcast %91 : f32 to vector<2x128xf32>
    %93 = arith.mulf %92, %33 : vector<2x128xf32>
    %94 = arith.addf %90, %93 : vector<2x128xf32>
    %c11 = arith.constant 11 : index
    %95 = memref.load %arg5[%c11] : memref<16xf32, #tpu.memory_space<smem>>
    %96 = vector.broadcast %95 : f32 to vector<2x128xf32>
    %97 = arith.mulf %96, %42 : vector<2x128xf32>
    %98 = arith.addf %94, %97 : vector<2x128xf32>
    %c2_35 = arith.constant 2 : index
    %99 = memref.load %arg6[%c2_35] : memref<4xf32, #tpu.memory_space<smem>>
    %100 = vector.broadcast %99 : f32 to vector<2x128xf32>
    %101 = arith.addf %98, %100 : vector<2x128xf32>
    %102 = arith.subf %101, %26 : vector<2x128xf32>
    %103 = arith.mulf %102, %102 : vector<2x128xf32>
    %104 = arith.addf %83, %103 : vector<2x128xf32>
    %c12 = arith.constant 12 : index
    %105 = memref.load %arg5[%c12] : memref<16xf32, #tpu.memory_space<smem>>
    %106 = vector.broadcast %105 : f32 to vector<2x128xf32>
    %107 = arith.mulf %106, %15 : vector<2x128xf32>
    %c13 = arith.constant 13 : index
    %108 = memref.load %arg5[%c13] : memref<16xf32, #tpu.memory_space<smem>>
    %109 = vector.broadcast %108 : f32 to vector<2x128xf32>
    %110 = arith.mulf %109, %24 : vector<2x128xf32>
    %111 = arith.addf %107, %110 : vector<2x128xf32>
    %c14 = arith.constant 14 : index
    %112 = memref.load %arg5[%c14] : memref<16xf32, #tpu.memory_space<smem>>
    %113 = vector.broadcast %112 : f32 to vector<2x128xf32>
    %114 = arith.mulf %113, %33 : vector<2x128xf32>
    %115 = arith.addf %111, %114 : vector<2x128xf32>
    %c15 = arith.constant 15 : index
    %116 = memref.load %arg5[%c15] : memref<16xf32, #tpu.memory_space<smem>>
    %117 = vector.broadcast %116 : f32 to vector<2x128xf32>
    %118 = arith.mulf %117, %42 : vector<2x128xf32>
    %119 = arith.addf %115, %118 : vector<2x128xf32>
    %c3_36 = arith.constant 3 : index
    %120 = memref.load %arg6[%c3_36] : memref<4xf32, #tpu.memory_space<smem>>
    %121 = vector.broadcast %120 : f32 to vector<2x128xf32>
    %122 = arith.addf %119, %121 : vector<2x128xf32>
    %123 = arith.subf %122, %35 : vector<2x128xf32>
    %124 = arith.mulf %123, %123 : vector<2x128xf32>
    %125 = arith.addf %104, %124 : vector<2x128xf32>
    %c0_37 = arith.constant 0 : index
    %c0_38 = arith.constant 0 : index
    %126 = vector.load %arg10[%c0_37, %c0_38] : memref<2x128xf32, #tpu.memory_space<vmem>>, vector<2x128xf32>
    %127 = arith.addf %126, %125 : vector<2x128xf32>
    %c0_39 = arith.constant 0 : index
    %c0_40 = arith.constant 0 : index
    %128 = vector.load %arg10[%c0_39, %c0_40] : memref<2x128xf32, #tpu.memory_space<vmem>>, vector<2x128xf32>
    tpu.vector_store %arg10[%c0_39, %c0_40], %127 {strides = array<i32>} : memref<2x128xf32, #tpu.memory_space<vmem>>, vector<2x128xf32>,
    %c0_i32_41 = arith.constant 0 : i32
    %129 = arith.cmpi eq, %arg2, %c0_i32_41 : i32
    %130 = arith.extui %129 : i1 to i32
    %c0_i32_42 = arith.constant 0 : i32
    %131 = arith.cmpi ne, %130, %c0_i32_42 : i32
    scf.if %131 {
      %c0_43 = arith.constant 0 : index
      %c0_44 = arith.constant 0 : index
      %132 = vector.load %arg10[%c0_43, %c0_44] : memref<2x128xf32, #tpu.memory_space<vmem>>, vector<2x128xf32>
      %cst = arith.constant dense<0.000000e+00> : vector<128xf32>
      %133 = vector.multi_reduction <add>, %132, %cst [0] : vector<2x128xf32> to vector<128xf32>
      %134 = vector.shape_cast %133 : vector<128xf32> to vector<1x128xf32>
      %c0_45 = arith.constant 0 : index
      %c0_46 = arith.constant 0 : index
      %c0_47 = arith.constant 0 : index
      %c0_48 = arith.constant 0 : index
      %135 = vector.load %arg9[%c0_45, %c0_46, %c0_47, %c0_48] : memref<1x1x1x128xf32, #tpu.memory_space<vmem>>, vector<1x1x1x128xf32>
      %136 = vector.shape_cast %135 : vector<1x1x1x128xf32> to vector<1x128xf32>
      %137 = vector.shape_cast %134 : vector<1x128xf32> to vector<1x1x1x128xf32>
      tpu.vector_store %arg9[%c0_45, %c0_46, %c0_47, %c0_48], %137 {strides = array<i32>} : memref<1x1x1x128xf32, #tpu.memory_space<vmem>>, vector<1x1x1x128xf32>,
    } else {
    }
    return
  }
  func.func @transform_0(%arg0: i32, %arg1: i32, %arg2: i32) -> i32 {
    %c0_i32 = arith.constant 0 : i32
    %c0_i32_0 = arith.constant 0 : i32
    return %c0_i32 : i32
  }
  func.func @transform_1(%arg0: i32, %arg1: i32, %arg2: i32) -> i32 {
    %c0_i32 = arith.constant 0 : i32
    %c0_i32_0 = arith.constant 0 : i32
    return %c0_i32 : i32
  }
  func.func @transform_2(%arg0: i32, %arg1: i32, %arg2: i32) -> i32 {
    %c0_i32 = arith.constant 0 : i32
    %c0_i32_0 = arith.constant 0 : i32
    return %c0_i32 : i32
  }
  func.func @transform_3(%arg0: i32, %arg1: i32, %arg2: i32) -> i32 {
    %c0_i32 = arith.constant 0 : i32
    %c0_i32_0 = arith.constant 0 : i32
    return %c0_i32 : i32
  }
  func.func @transform_4(%arg0: i32, %arg1: i32, %arg2: i32) -> (i32, i32, i32, i32) {
    %c1_i32 = arith.constant 1 : i32
    %0 = arith.muli %arg1, %c1_i32 : i32
    %1 = arith.addi %0, %arg2 : i32
    %c0_i32 = arith.constant 0 : i32
    %c0_i32_0 = arith.constant 0 : i32
    %c0_i32_1 = arith.constant 0 : i32
    return %arg0, %c0_i32, %1, %c0_i32_0 : i32, i32, i32, i32
  }
  func.func @transform_5(%arg0: i32, %arg1: i32, %arg2: i32) -> (i32, i32, i32, i32) {
    %c1_i32 = arith.constant 1 : i32
    %0 = arith.muli %arg1, %c1_i32 : i32
    %1 = arith.addi %0, %arg2 : i32
    %c0_i32 = arith.constant 0 : i32
    %c0_i32_0 = arith.constant 0 : i32
    %c0_i32_1 = arith.constant 0 : i32
    return %arg0, %c0_i32, %1, %c0_i32_0 : i32, i32, i32, i32
  }
  func.func @transform_6(%arg0: i32, %arg1: i32, %arg2: i32) -> (i32, i32, i32, i32) {
    %c0_i32 = arith.constant 0 : i32
    %c0_i32_0 = arith.constant 0 : i32
    %c0_i32_1 = arith.constant 0 : i32
    return %arg0, %arg1, %c0_i32, %c0_i32_0 : i32, i32, i32, i32
  }
}

</mosaic_0001>

<bundles_post_ra>
// kernel: tpu_custom_call.1
= control target key start
LH: loop header
LB: loop body
LE: loop exit
PB: predicated region body
PF: predicated region fallthrough
CT: control target
= control target key end

     0   :  { %s1402_s0 = inlined_call_operand.hbm [shape: f32[2], index: 0, kind: input, shape index: {}]   ;;  %s1403_s1 = inlined_call_operand.vmem [shape: f32[2], index: 1, kind: input, shape index: {}]   ;;  %s1404_s2 = inlined_call_operand.vmem [shape: f32[16], index: 2, kind: input, shape index: {}]   ;;  %s1405_s3 = inlined_call_operand.hbm [shape: f32[4], index: 3, kind: input, shape index: {}]   ;;  %s1406_s4 = inlined_call_operand.hbm [shape: f32[2,4,2,128], index: 4, kind: input, shape index: {}]   ;;  %s1407_s5 = inlined_call_operand.vmem [shape: f32[2,4,2,128], index: 5, kind: input, shape index: {}]   ;;  %s1408_s6 = inlined_call_operand.hbm [shape: f32[2,1,1,128], index: 6, kind: output, shape index: {}]  }
   0x1   :  { %1413 = sst [smem:[#allocation21_spill]] %s1402_s0 }
   0x2   :  { %1414 = sst [smem:[#allocation22_spill]] %s1403_s1 }
   0x3   :  { %11 = vsyncpa [#allocation6], 0 }
   0x4   :  { %12 = vsyncpa [#allocation7], 0 }
   0x5   :  { %13 = vsyncpa [#allocation10], 0 }
   0x6   :  { %14 = vsyncpa [#allocation12], 0 }
   0x7   :  { %15 = vsyncpa [#allocation4], 0 }
   0x8   :  { %17 = vsyncpa [#allocation4 + $0x1], 0 }
   0x9   :  { %18 = vsyncpa [#allocation5], 0 }
   0xa   :  { %20 = vsyncpa [#allocation5 + $0x1], 0  ;;  %s1059_s21 = smov 0   ;;  %s1061_s22 = smov 0  }
   0xb   :  { %s1063_s23 = smov 0   ;;  %s1065_s24 = smov 0  }
   0xc   :  { %s1067_s25 = smov 0   ;;  %s1069_s26 = smov 0  }
   0xd LB: > { %s675_s27 = sadd.s32 4294967295, %s1013_s26   ;;  %s676_s28 = sadd.s32 4294967294, %s1013_s26   ;;  %s1013_s26 = sphi %s1069_s26, %s26_s26   ;;  %s1009_s25 = sphi %s1067_s25, %s1434_s25   ;;  %s1005_s24 = sphi %s1065_s24, %s1433_s24   ;;  %s1001_s23 = sphi %s1063_s23, %s1432_s23   ;;  %s997_s22 = sphi %s1061_s22, %s1431_s22   ;;  %s993_s21 = sphi %s1059_s21, %s1430_s21  }
   0xe   : > { %p153_p0 = scmp.ne.s32.totalorder %s997_s22, %s993_s21  ;;  %p1093_p1 = scmp.eq.s32.totalorder %s675_s27, 0 }
   0xf   : > { %p1097_p2 = scmp.eq.s32.totalorder %s675_s27, 1  ;;  %p215_p3 = scmp.eq.s32.totalorder %s676_s28, 1 }
  0x10   : > { %s1415_s29 = scalar_select %p1093_p1, 1, 0 }
  0x11   : > { %p1103_p4 = por %p1093_p1, %p153_p0  ;;  %p677_p5 = scmp.ge.s32.totalorder %s1013_s26, 1 }
  0x12   : > { %p1108_p6 = por %p215_p3, %p153_p0  ;;  %p222_p7 = scmp.lt.s32.totalorder %s1013_s26, 3 }
  0x13   : > { %s1417_s7 = scalar_select %p1103_p4, 1, 0 }
  0x14   : > { %s1418_s8 = scalar_select %p1108_p6, 1, 0 }
  0x15   : > { %p1113_p8 = pnand %p677_p5, %p222_p7  ;;  %s1420_s1 = sld [smem:[#allocation22_spill]] }
  0x16   : > { %s255_s15 = sshll.u32 %s1404_s2, 4  ;;  %s1422_s0 = sld [smem:[#allocation21_spill]]  ;;  %s1132_s15 = int_to_ptr.vmem [resolvable:$true] %s255_s15 }
  0x17   : > { %p743_p10 = pneg %p1113_p8 }
  0x19   : > { %p1128_p11 = pnand %p743_p10, %p1093_p1 }
  0x1b   : > { %s244_s12 = sshll.u32 %s1420_s1, 4  ;;  %p831_p13 = pneg %p1128_p11  ;;  %s245_s12 = int_to_ptr.vmem [resolvable:$true] %s244_s12 }
  0x1c   : > { %s829_s19 = scalar_lea.hbm %s1422_s0, 16 }
  0x1d   : > { %p830_p12 = scmp.ne.s32.totalorder %s1422_s0, %s829_s19  ;;  %p836_p5 = scmp.lt.u32.totalorder %s829_s19, %s1422_s0 }
  0x1f   : > { %p832_p0 = pnand %p831_p13, %p830_p12 }
  0x21   : > { %p833_p3 = pneg %p832_p0 }
  0x23   : > { %p838_p7 = pnand %p836_p5, %p833_p3 }
  0x25   : > { %841 = shalt.err (!%p838_p7)
}
  0x26   : > { %s1015_s11 = smov [#allocation3]   ;;  %s842_s17 = scalar_lea.vmem %s245_s12, 16 }
  0x27   : > { %746 = dma.hbm_to_smem (!%p1128_p11), %s1422_s0, 16, %s1015_s11, [#allocation6]  }
  0x28   : > { %p843_p10 = scmp.ne.s32.totalorder %s245_s12, %s842_s17  ;;  %p850_p9 = scmp.lt.s32.totalorder %s245_s12, %s245_s12 }
  0x29   : > { %p851_p6 = scmp.lt.s32.totalorder %s842_s17, %s842_s17 }
  0x2a   : > { %p845_p12 = pnand %p843_p10, %p831_p13 }
  0x2b   : > { %p852_p4 = por %p851_p6, %p850_p9 }
  0x2c   : > { %p846_p0 = pneg %p845_p12 }
  0x2e   : > { %p853_p1 = pnand %p852_p4, %p846_p0 }
  0x30   : > { %856 = shalt.err (!%p853_p1)
}
  0x31   : > { %s1016_s18 = smov [#allocation8]   ;;  %s857_s19 = scalar_lea.vmem %s1132_s15, 16 }
  0x32   : > { %749 = dma.vmem_to_smem (!%p1128_p11), %s245_s12, 16, %s1016_s18, [#allocation7]  }
  0x33   : > { %p858_p3 = scmp.ne.s32.totalorder %s1132_s15, %s857_s19  ;;  %p865_p10 = scmp.lt.s32.totalorder %s1132_s15, %s1132_s15 }
  0x34   : > { %p866_p12 = scmp.lt.s32.totalorder %s857_s19, %s857_s19 }
  0x35   : > { %p860_p5 = pnand %p858_p3, %p831_p13 }
  0x36   : > { %p867_p6 = por %p866_p12, %p865_p10 }
  0x37   : > { %p861_p7 = pneg %p860_p5 }
  0x39   : > { %p868_p4 = pnand %p867_p6, %p861_p7 }
  0x3b   : > { %871 = shalt.err (!%p868_p4)
}
  0x3c   : > { %s1017_s20 = smov [#allocation9]   ;;  %s872_s28 = scalar_lea.hbm %s1405_s3, 16 }
  0x3d   : > { %752 = dma.vmem_to_smem (!%p1128_p11), %s1132_s15, 16, %s1017_s20, [#allocation10]  }
  0x3e   : > { %p873_p1 = scmp.ne.s32.totalorder %s1405_s3, %s872_s28  ;;  %p879_p3 = scmp.lt.u32.totalorder %s872_s28, %s1405_s3 }
  0x40   : > { %p875_p9 = pnand %p873_p1, %p831_p13 }
  0x42   : > { %p876_p0 = pneg %p875_p9 }
  0x44   : > { %p881_p5 = pnand %p879_p3, %p876_p0 }
  0x46   : > { %884 = shalt.err (!%p881_p5)
}
  0x47   : > { %s1018_s17 = smov [#allocation11]   ;;  %s45_s19 = sadd.s32 1, %s1009_s25 }
  0x48   : > { %755 = dma.hbm_to_smem (!%p1128_p11), %s1405_s3, 16, %s1018_s17, [#allocation12]  }
  0x49   : > { %s140_s20 = sadd.s32 1, %s1001_s23  ;;  %p47_p13 = scmp.ge.s32.totalorder %s45_s19, 2 }
  0x4a   : > { %p147_p7 = scmp.ne.s32.totalorder %s1001_s23, %s997_s22  ;;  %p148_p10 = scmp.eq.s32.totalorder %s1013_s26, 0 }
  0x4b   : > { %p768_p12 = scmp.lt.s32.totalorder %s1013_s26, 2  ;;  %s1436_s19 = smov (%p47_p13, %s45_s19), 0 }
  0x4c   : > { %p149_p6 = por %p148_p10, %p147_p7  ;;  %p1195_p4 = por %p1097_p2, %p147_p7 }
  0x4d   : > { %s135_s27 = ssub.s32 %s1009_s25, %s1436_s19  ;;  %s275_s12 = sand.u32 1, %s1001_s23  }
  0x4e   : > { %s1423_s16 = scalar_select %p1195_p4, 1, 0 }
  0x4f   : > { %p138_p1 = scmp.eq.s32.totalorder %s135_s27, 0  ;;  %s683_s28 = sshll.u32 %s275_s12, 3 }
  0x50   : > { %s721_s10 = sshll.u32 %s1009_s25, 7  ;;  %s279_s30 = scalar_lea.vmem [#allocation13], %s683_s28 }
  0x51   : > { %s1204_s11 = scalar_select %p138_p1, %s1001_s23, %s140_s20  }
  0x52   : > { %s1209_s17 = scalar_lea.hbm %s1406_s4, %s721_s10  ;;  %s288_s15 = sshll.u32 %s279_s30, 4  ;;  %s1217_s15 = int_to_ptr.vmem [resolvable:$true] %s288_s15 }
  0x53   : > { %p1213_p2 = pnand %p768_p12, %p149_p6  ;;  %s1219_s20 = scalar_lea.sflag [#allocation4], %s275_s12 }
  0x54   : > { %s885_s27 = scalar_lea.hbm %s1209_s17, 128  ;;  %s890_s13 = scalar_lea.hbm %s1406_s4, 256 }
  0x55   : > { %p886_p11 = scmp.ne.s32.totalorder %s1209_s17, %s885_s27  ;;  %p887_p9 = pneg %p1213_p2 }
  0x56   : > { %p891_p5 = scmp.lt.u32.totalorder %s1209_s17, %s1406_s4  ;;  %p892_p13 = scmp.lt.u32.totalorder %s890_s13, %s885_s27 }
  0x57   : > { %p888_p0 = pnand %p887_p9, %p886_p11  ;;  %p894_p10 = scmp.lt.u32.totalorder %s885_s27, %s1209_s17 }
  0x58   : > { %p893_p7 = por %p892_p13, %p891_p5 }
  0x59   : > { %p889_p3 = pneg %p888_p0 }
  0x5a   : > { %p895_p12 = por %p894_p10, %p893_p7 }
  0x5c   : > { %p896_p6 = pnand %p895_p12, %p889_p3 }
  0x5e   : > { %899 = shalt.err (!%p896_p6)
}
  0x5f   : > { %s900_s12 = scalar_lea.vmem %s1217_s15, 128  ;;  %s1019_s28 = smov [#allocation13]  }
  0x60   : > { %p901_p1 = scmp.ne.s32.totalorder %s1217_s15, %s900_s12  ;;  %s905_s10 = sshll.u32 %s1019_s28, 4  ;;  %s906_s10 = int_to_ptr.vmem [resolvable:$false] %s905_s10 }
  0x61   : > { %s907_s14 = scalar_lea.vmem %s906_s10, 256  ;;  %p908_p4 = scmp.lt.s32.totalorder %s1217_s15, %s906_s10 }
  0x62   : > { %p903_p11 = pnand %p901_p1, %p887_p9  ;;  %p909_p5 = scmp.lt.s32.totalorder %s907_s14, %s900_s12 }
  0x64   : > { %p904_p0 = pneg %p903_p11  ;;  %p910_p13 = por %p909_p5, %p908_p4 }
  0x66   : > { %p911_p7 = pnand %p910_p13, %p904_p0 }
  0x68   : > { %914 = shalt.err (!%p911_p7)
}
  0x69   : > { %s1020_s27 = smov 32   ;;  %s1021_s13 = smov 2  }
  0x6a   : > { %759 = dma.hbm_to_vmem [thread:$0]  (!%p1213_p2), %s1209_s17, 128, %s1217_s15, %s1219_s20, %s1020_s27, %s1020_s27, %s1021_s13  }
  0x6b   : > { %313 = sbr.rel (%p1113_p8) target bundleno = 201 (0xc9), region = 44  ;;  %p1425_p9 = scmp.ne.s32.totalorder (!%p1113_p8), %s1415_s29, 0 }
  0x72   : > { %968 = dma.done.wait (%p1425_p9), [#allocation6], 16  }
  0x73   : > { %970 = vsyncadd (%p1425_p9), [#allocation6], 4294967280 }
  0x74   : > { %972 = dma.done.wait (%p1425_p9), [#allocation7], 16  }
  0x75   : > { %974 = vsyncadd (%p1425_p9), [#allocation7], 4294967280 }
  0x76   : > { %976 = dma.done.wait (%p1425_p9), [#allocation10], 16  }
  0x77   : > { %978 = vsyncadd (%p1425_p9), [#allocation10], 4294967280 }
  0x78   : > { %980 = dma.done.wait (%p1425_p9), [#allocation12], 16  }
  0x79   : > { %982 = vsyncadd (%p1425_p9), [#allocation12], 4294967280  ;;  %s1266_s9 = sand.u32 1, %s997_s22   ;;  %p1426_p8 = scmp.ne.s32.totalorder %s1417_s7, 0 }
  0x7a   : > { %s691_s17 = sshll.u32 %s1266_s9, 3  ;;  %s332_s15 = scalar_lea.sflag [#allocation4], %s1266_s9 }
  0x7b   : > { %s335_s18 = scalar_lea.vmem [#allocation13], %s691_s17 }
  0x7c   : > { %984 = dma.done.wait (%p1426_p8), %s332_s15, 128  }
  0x7d   : > { %986 = vsyncadd (%p1426_p8), %s332_s15, 4294967168 }
  0x7e   : > { %340 = sfence }
  0x7f   : > { %p375_p4 = scmp.lt.s32.totalorder %s1005_s24, 1  ;;  %s389_s29 = sld [smem:[#allocation3 + %s1005_s24]]  ;;  %v1022_v0 = vmov 0.0   ;;  %v392_v1 = vld [vmem:[%s335_s18] sm:$0x3]  ;;  %vm509_vm0 = vcmask 1041408  }
  0x80   : > { %388 = vst [vmem:[#allocation2] sm:$0x3] %v1022_v0  ;;  %s390_s20 = sld [smem:[#allocation8 + %s1005_s24]]  ;;  %v695_v2 = vld [vmem:[%s335_s18 + $0x2] sm:$0x3]  ;;  %p1427_p3 = scmp.ne.s32.totalorder %s1423_s16, 0 }
  0x81   : > { %s376_s30 = scalar_select %p375_p4, %s1005_s24, 1  ;;  %v697_v3 = vld [vmem:[%s335_s18 + $0x4] sm:$0x3]  ;;  %v699_v4 = vld [vmem:[%s335_s18 + $0x6] sm:$0x3] }
  0x82   : > { %s1278_s12 = sld [smem:[#allocation9]]  ;;  %s1280_s28 = sld [smem:[#allocation9 + $0x1]] }
  0x83   : > { %s722_s10 = sshll.u32 %s376_s30, 3  ;;  %s1282_s7 = sld [smem:[#allocation9 + $0x2]] }
  0x84   : > { %s382_s13 = scalar_lea.vmem %s1407_s5, %s722_s10  ;;  %s1287_s17 = sld [smem:[#allocation9 + $0x3]] }
  0x85   : > { %v1289_v5 = vld [vmem:[%s382_s13] sm:$0x3]  ;;  %v393_v6 = vstv %s389_s29  ;;  %v1291_v7 = vld [vmem:[%s382_s13 + $0x2] sm:$0x3]  ;;  %v1293_v8 = vld [vmem:[%s382_s13 + $0x4] sm:$0x3] }
  0x86   : > { %v394_v9 = vmul.f32 %v393_v6, %v392_v1  ;;  %v395_v10 = vstv %s390_s20  ;;  %v402_v11 = vmul.f32 %v695_v2, %v393_v6  ;;  %v409_v12 = vmul.f32 %v697_v3, %v393_v6  ;;  %v1295_v13 = vld [vmem:[%s382_s13 + $0x6] sm:$0x3]  ;;  %s1297_s15 = sld [smem:[#allocation11]]  ;;  %s1299_s18 = sld [smem:[#allocation9 + $0x4]] }
  0x87   : > { %v396_v14 = vmul.f32 %v395_v10, %v1289_v5  ;;  %v403_v15 = vmul.f32 %v1291_v7, %v395_v10  ;;  %v410_v16 = vmul.f32 %v1293_v8, %v395_v10  ;;  %v416_v17 = vmul.f32 %v699_v4, %v393_v6  ;;  %s1304_s29 = sld [smem:[#allocation9 + $0x5]]  ;;  %s1306_s20 = sld [smem:[#allocation9 + $0x6]] }
  0x88   : > { %v417_v18 = vmul.f32 %v1295_v13, %v395_v10  ;;  %v420_v19 = vstv %s1278_s12  ;;  %v423_v20 = vstv %s1280_s28  ;;  %s1311_s30 = sld [smem:[#allocation9 + $0x7]]  ;;  %s1313_s10 = sld [smem:[#allocation11 + $0x1]] }
  0x89   : > { %v397_v21 = vadd.f32 %v396_v14, %v394_v9  ;;  %v404_v22 = vadd.f32 %v403_v15, %v402_v11  ;;  %v411_v23 = vadd.f32 %v410_v16, %v409_v12  ;;  %v427_v24 = vstv %s1282_s7  ;;  %s708_s14 = sld [smem:[#allocation9 + $0x8]]  ;;  %s709_s27 = sld [smem:[#allocation9 + $0x9]] }
  0x8a   : > { %v418_v25 = vadd.f32 %v417_v18, %v416_v17  ;;  %v431_v26 = vstv %s1287_s17  ;;  %s1317_s13 = sld [smem:[#allocation9 + $0xa]]  ;;  %s1319_s12 = sld [smem:[#allocation9 + $0xb]] }
  0x8b   : > { %v421_v27 = vmul.f32 %v420_v19, %v397_v21  ;;  %v424_v28 = vmul.f32 %v423_v20, %v404_v22  ;;  %v428_v29 = vmul.f32 %v427_v24, %v411_v23  ;;  %s1321_s28 = sld [smem:[#allocation9 + $0xc]]  ;;  %s1324_s7 = sld [smem:[#allocation9 + $0xd]]  ;;  %v502_v24 = vld [vmem:[#allocation2] sm:$0x3] }
  0x8c   : > { %v432_v30 = vmul.f32 %v431_v26, %v418_v25  ;;  %v440_v31 = vstv %s1299_s18  ;;  %s1326_s0 = sld [smem:[#allocation9 + $0xe]]  ;;  %s1330_s17 = sld [smem:[#allocation11 + $0x2]]  ;;  %v435_v36 = vstv %s1297_s15 }
  0x8d   : > { %v425_v32 = vadd.f32 %v424_v28, %v421_v27  ;;  %v441_v33 = vmul.f32 %v440_v31, %v397_v21  ;;  %v443_v34 = vstv %s1304_s29  ;;  %v447_v35 = vstv %s1306_s20  ;;  %s1332_s1 = sld [smem:[#allocation9 + $0xf]]  ;;  %s717_s15 = sld [smem:[#allocation11 + $0x3]] }
  0x8e   : > { %v444_v37 = vmul.f32 %v443_v34, %v404_v22  ;;  %v448_v38 = vmul.f32 %v447_v35, %v411_v23  ;;  %v451_v39 = vstv %s1311_s30  ;;  %v455_v49 = vstv %s1313_s10  ;;  %s718_s18 = sshll.u32 %s1005_s24, 4  ;;  %s519_s10 = scalar_lea.sflag [#allocation5], %s1266_s9 }
  0x8f   : > { %v429_v40 = vadd.f32 %v428_v29, %v425_v32  ;;  %v452_v41 = vmul.f32 %v451_v39, %v418_v25  ;;  %v461_v42 = vstv %s708_s14  ;;  %v464_v43 = vstv %s709_s27  ;;  %s1355_s30 = scalar_lea.hbm %s1408_s6, %s718_s18  ;;  %s1023_s24 = smov [#allocation14]  }
  0x90   : > { %v445_v44 = vadd.f32 %v444_v37, %v441_v33  ;;  %v462_v45 = vmul.f32 %v461_v42, %v397_v21  ;;  %v465_v46 = vmul.f32 %v464_v43, %v404_v22  ;;  %v468_v47 = vstv %s1317_s13  ;;  %s919_s27 = sshll.u32 %s1023_s24, 4  ;;  %s920_s27 = int_to_ptr.vmem [resolvable:$false] %s919_s27 }
  0x91   : > { %v433_v48 = vadd.f32 %v432_v30, %v429_v40  ;;  %v469_v50 = vmul.f32 %v468_v47, %v411_v23  ;;  %v472_v51 = vstv %s1319_s12  ;;  %v482_v55 = vstv %s1321_s28  ;;  %s921_s13 = scalar_lea.vmem %s920_s27, 32 }
  0x92   : > { %v449_v52 = vadd.f32 %v448_v38, %v445_v44  ;;  %v466_v53 = vadd.f32 %v465_v46, %v462_v45  ;;  %v473_v54 = vmul.f32 %v472_v51, %v418_v25  ;;  %v483_v57 = vmul.f32 %v482_v55, %v397_v21 }
  0x93   : > { %v436_v56 = vadd.f32 %v435_v36, %v433_v48  ;;  %v485_v58 = vstv %s1324_s7  ;;  %v489_v59 = vstv %s1326_s0  ;;  %v476_v1 = vstv %s1330_s17  ;;  %s372_s0 = scalar_lea.vmem [#allocation14], %s1266_s9 }
  0x94   : > { %v453_v60 = vadd.f32 %v452_v41, %v449_v52  ;;  %v470_v61 = vadd.f32 %v469_v50, %v466_v53  ;;  %v486_v62 = vmul.f32 %v485_v58, %v404_v22  ;;  %v490_v63 = vmul.f32 %v489_v59, %v411_v23 }
  0x95   : > { %v437_v0 = vsub.f32 %v436_v56, %v1289_v5  ;;  %v493_v2 = vstv %s1332_s1  ;;  %v497_v15 = vstv %s717_s15  ;;  %s532_s1 = sshll.u32 %s372_s0, 4  ;;  %s1350_s1 = int_to_ptr.vmem [resolvable:$true] %s532_s1 }
  0x96   : > { %v456_v3 = vadd.f32 %v455_v49, %v453_v60  ;;  %v474_v4 = vadd.f32 %v473_v54, %v470_v61  ;;  %v487_v6 = vadd.f32 %v486_v62, %v483_v57  ;;  %v494_v9 = vmul.f32 %v493_v2, %v418_v25  ;;  %s915_s14 = scalar_lea.vmem %s1350_s1, 16  ;;  %p922_p6 = scmp.lt.s32.totalorder %s1350_s1, %s920_s27 }
  0x97   : > { %v438_v10 = vmul.f32 %v437_v0, %v437_v0  ;;  %p916_p2 = scmp.ne.s32.totalorder %s1350_s1, %s915_s14  ;;  %p923_p1 = scmp.lt.s32.totalorder %s921_s13, %s915_s14 }
  0x98   : > { %v457_v11 = vsub.f32 %v456_v3, %v1291_v7  ;;  %v477_v12 = vadd.f32 %v476_v1, %v474_v4  ;;  %v491_v14 = vadd.f32 %v490_v63, %v487_v6 }
  0x99   : > { %p917_p10 = pnand %p916_p2, %p1427_p3  ;;  %p924_p11 = por %p923_p1, %p922_p6 }
  0x9a   : > { %v458_v16 = vmul.f32 %v457_v11, %v457_v11  ;;  %v478_v17 = vsub.f32 %v477_v12, %v1293_v8  ;;  %v495_v18 = vadd.f32 %v494_v9, %v491_v14 }
  0x9b   : > { %p918_p12 = pneg %p917_p10 }
  0x9c   : > { %v459_v19 = vadd.f32 %v458_v16, %v438_v10  ;;  %v479_v20 = vmul.f32 %v478_v17, %v478_v17  ;;  %v498_v5 = vadd.f32 %v497_v15, %v495_v18 }
  0x9d   : > { %p925_p0 = pnand %p924_p11, %p918_p12 }
  0x9e   : > { %v480_v21 = vadd.f32 %v479_v20, %v459_v19  ;;  %v499_v22 = vsub.f32 %v498_v5, %v1295_v13 }
  0xa0   : > { %v500_v23 = vmul.f32 %v499_v22, %v499_v22 }
  0xa2   : > { %v501_v25 = vadd.f32 %v500_v23, %v480_v21 }
  0xa4   : > { %v503_v26 = vadd.f32 %v502_v24, %v501_v25 }
  0xa6   : > { %504 = vst [vmem:[#allocation2] sm:$0x3] %v503_v26 }
  0xad   : > { %v508_v7 = vld [vmem:[#allocation2] sm:$0x3] }
  0xae   : > { %v510_v27 = vsel %vm509_vm0, %v508_v7, 0.0 }
  0xaf   : > { %v511_v8 = vrot.slane %v510_v27, 4 }
  0xb1   : > { %v512_v28 = vadd.f32 %v511_v8, %v510_v27 }
  0xb3   : > { %v513_v29 = vrot.slane %v512_v28, 2 }
  0xb5   : > { %v514_v30 = vadd.f32 %v513_v29, %v512_v28 }
  0xb7   : > { %v515_v31 = vrot.slane %v514_v30, 1 }
  0xb9   : > { %v516_v32 = vadd.f32 %v515_v31, %v514_v30 }
  0xbb   : > { %517 = vst [vmem:[%s372_s0] sm:$0x1] %v516_v32 }
  0xbc   : > { %928 = shalt.err (!%p925_p0)
}
  0xbd   : > { %s929_s9 = scalar_lea.hbm %s1355_s30, 16  ;;  %s933_s7 = scalar_lea.hbm %s1408_s6, 32 }
  0xbe   : > { %p930_p5 = scmp.ne.s32.totalorder %s1355_s30, %s929_s9  ;;  %p934_p9 = scmp.lt.u32.totalorder %s1355_s30, %s1408_s6 }
  0xbf   : > { %p935_p8 = scmp.lt.u32.totalorder %s933_s7, %s929_s9  ;;  %p937_p2 = scmp.lt.u32.totalorder %s929_s9, %s1355_s30 }
  0xc0   : > { %p931_p13 = pnand %p930_p5, %p1427_p3 }
  0xc1   : > { %p936_p4 = por %p935_p8, %p934_p9 }
  0xc2   : > { %p932_p7 = pneg %p931_p13 }
  0xc3   : > { %p938_p10 = por %p937_p2, %p936_p4 }
  0xc5   : > { %p939_p12 = pnand %p938_p10, %p932_p7 }
  0xc7   : > { %942 = shalt.err (!%p939_p12)
}
  0xc8   : > { %741 = dma.vmem_to_hbm [thread:$0]  (%p1427_p3), %s1350_s1, 16, %s1355_s30, %s519_s10  }
  0xc9 PF: > { %s544_s0 = sand.u32 1, %s993_s21   ;;  %p1428_p6 = scmp.ne.s32.totalorder %s1418_s8, 0 }
  0xca   : > { %p1429_p1 = scmp.ge.s32.totalorder %s1013_s26, 2  ;;  %s545_s18 = scalar_lea.sflag [#allocation5], %s544_s0 }
  0xcc   : > { %p761_p11 = pnand %p1429_p1, %p1428_p6 }
  0xce   : > { %988 = dma.done.wait (!%p761_p11), %s545_s18, 16  }
  0xcf   : > { %990 = vsyncadd (!%p761_p11), %s545_s18, 4294967280  ;;  %s26_s26 = sadd.s32 1, %s1013_s26   ;;  %s1430_s21 = smov %s997_s22 }
  0xd0   : > { %p23_p0 = scmp.ge.s32.totalorder %s26_s26, 4   ;;  %s1431_s22 = smov %s1001_s23 }
  0xd1   : > { %s1432_s23 = smov %s1204_s11  ;;  %s1433_s24 = smov %s1009_s25 }
  0xd2   : > { %s1434_s25 = smov %s1436_s19  ;;  %25 = sbr.rel (!%p23_p0) target bundleno = 13 (0xd), region = 124 }
  0xd9   :  { %549 = vsyncpa [#allocation4], 1 }
  0xda   :  { %551 = vsyncpa [#allocation4 + $0x1], 1 }
  0xdb   :  { %552 = vsyncpa [#allocation5], 1 }
  0xdc   :  { %554 = vsyncpa [#allocation5 + $0x1], 1 }
  0xdd   :  { %555 = vsyncpa [#allocation6], 1 }
  0xde   :  { %557 = vsyncpa [#allocation6 + $0x1], 1 }
  0xdf   :  { %558 = vsyncpa [#allocation12], 1 }
  0xe0   :  { %559 = vsyncpa [#allocation7], 1 }
  0xe1   :  { %561 = vsyncpa [#allocation7 + $0x1], 1 }
  0xe2   :  { %562 = vsyncpa [#allocation10], 1 }

</bundles_post_ra>
